<compile_context>
chip_gen: v5e
topology: v5e:2x2
jax: 0.10.0
libtpu: 0.0.40
codegen_flags: <defaults>
</compile_context>

<pallas_src>
import functools
import math

import jax
import jax.numpy as jnp
from jax import lax
from jax.experimental import pallas as pl
from jax.experimental.pallas import tpu as pltpu


# Per-grid-step VMEM working-set target and requested scoped-VMEM limit.
# 24 MiB / 40 MiB are safe on every generation (v5e/v6e: 128 MiB physical,
# v7x: 64 MiB per TensorCore).
_VMEM_BUDGET_BYTES = 24 * 1024 * 1024
_VMEM_LIMIT_BYTES = 40 * 1024 * 1024

# Lane-dense packing caps: pack r = lcm(d,128)/d nodes per row only while the
# indicator matrices stay tiny and the MXU segmented-sum arithmetic intensity
# (~r flops/byte) stays far below the HBM roofline.
_MAX_PACKED_LANES = 2048
_MAX_PACK_FACTOR = 64


def _cdiv(a, b):
    return -(-a // b)


def _round_up(x, m):
    return _cdiv(x, m) * m


def _make_node_norm_kernel(node_norm_type: str, eps: float, power: float,
                           unbiased: bool, d: int, r: int):
    """Kernel body with norm-type / packing branches resolved at trace time."""
    inv_d = 1.0 / d
    denom = float(d - 1) if unbiased else float(d)
    # d == 1 with unbiased=True intentionally inherits torch's divide-by-zero.
    inv_denom = (1.0 / denom) if denom != 0.0 else float("inf")

    def compute(x, seg, seg_t):
        if r == 1:
            # Hidden dim spans full lanes: plain XLU lane reduction; (R,1)
            # results broadcast naturally against (R, p).
            def seg_sum(t):
                return jnp.sum(t, axis=-1, keepdims=True)

            def bcast(s):
                return s
        else:
            # Lane-dense packing: each p-lane row holds r nodes of width d.
            # Per-node segmented sums and broadcasts are matmuls with a block
            # indicator matrix on the (otherwise idle) MXU.
            def seg_sum(t):
                return jnp.dot(t, seg, preferred_element_type=jnp.float32)     # (R, r)

            def bcast(s):
                return jnp.dot(s, seg_t, preferred_element_type=jnp.float32)   # (R, p)

        if node_norm_type == 'm':
            mean = seg_sum(x) * inv_d
            return x - bcast(mean)
        if node_norm_type in ('n', 'v', 'srv', 'pr'):
            mean = seg_sum(x) * inv_d
            centered = x - bcast(mean)                       # reused below
            var = seg_sum(centered * centered) * inv_denom
            if node_norm_type == 'n':
                return centered * bcast(lax.rsqrt(var + eps))       # EUP rsqrt
            if node_norm_type == 'v':
                return x * bcast(lax.rsqrt(var + eps))
            if node_norm_type == 'srv':
                # x / sqrt(std) == x * (var + eps)**(-1/4)
                return x * bcast(lax.rsqrt(jnp.sqrt(var + eps)))
            # 'pr': x / std**power == x * (var + eps)**(-power/2)
            return x * bcast(jnp.exp(jnp.log(var + eps) * (-0.5 * power)))
        return x  # unknown type: passthrough, matches the PyTorch module

    if r == 1:
        def kernel(x_ref, o_ref):
            y = compute(x_ref[...].astype(jnp.float32), None, None)
            o_ref[...] = y.astype(o_ref.dtype)
    else:
        def kernel(x_ref, seg_ref, segt_ref, o_ref):
            y = compute(x_ref[...].astype(jnp.float32), seg_ref[...], segt_ref[...])
            o_ref[...] = y.astype(o_ref.dtype)
    return kernel


def _choose_tile_rows(rows: int, workset_bytes_per_row: int, sublane: int,
                      budget: int) -> int:
    """Largest sublane-aligned row tile within the VMEM working-set budget,
    preferring >= 4 grid steps (v7x 2-TC sharding + double-buffer overlap)."""
    max_tile = max(sublane,
                   (budget // max(workset_bytes_per_row, 1)) // sublane * sublane)
    if rows <= sublane:
        return rows                        # single block == full dim (legal)
    steps = max(_cdiv(rows, max_tile), min(4, rows // sublane))
    tile = min(max_tile, _round_up(_cdiv(rows, steps), sublane))
    # If rounding pushed the tile past the array extent, fall back to a single
    # full-extent block (block dim == array dim is always legal).
    return rows if tile >= rows else tile


@functools.partial(jax.jit, static_argnames=(
    "node_norm_type", "unbiased", "eps", "power_root"))
def node_norm(x, *, node_norm_type='n', unbiased=False, eps=1e-5, power_root=2):
    """Pallas NodeNorm forward.  x: [N, D], reduction over D (last axis)."""
    n, d = x.shape
    power = 1.0 / power_root
    itemsize = jnp.dtype(x.dtype).itemsize
    sublane = max(8, 32 // itemsize)        # 8 f32, 16 bf16, 32 int8/fp8

    # Lane-dense packing for narrow hidden dims: fold r rows so the packed row
    # width p = r*d is a multiple of 128 (unmasked full-width stores / DMA).
    r = 1
    if d < 128:
        p_try = (d * 128) // math.gcd(d, 128)        # lcm(d, 128)
        r_try = p_try // d
        if p_try <= _MAX_PACKED_LANES and r_try <= _MAX_PACK_FACTOR:
            r = r_try
    p = r * d

    pad_rows = (-n) % r
    if pad_rows:
        # Tiny pad (< r rows) only so the packed reshape is legal; fused into
        # the kernel's operand read via allow_input_fusion (no extra HBM pass).
        # Padded nodes give var=0 -> rsqrt(eps): finite, isolated per segment.
        x = jnp.pad(x, ((0, pad_rows), (0, 0)))
    n_g = n + pad_rows
    rows = n_g // r
    xp = x.reshape(rows, p)                 # row-major: free reshape

    # Per-packed-row working set: in + out double-buffered at input dtype plus
    # ~5 full-width f32 temporaries (upcast x, centered, two bcasts, y).
    workset_per_row = p * (4 * itemsize + 20)

    inputs = [xp]
    budget = _VMEM_BUDGET_BYTES
    if r > 1:
        seg_id = jnp.arange(p, dtype=jnp.int32) // d
        seg = (seg_id[:, None]
               == jnp.arange(r, dtype=jnp.int32)[None, :]).astype(jnp.float32)  # (p, r)
        seg_t = seg.T                                                           # (r, p)
        inputs += [seg, seg_t]
        budget -= 4 * (p * r * 4)           # both indicator matrices, 2x buffered

    tile_rows = _choose_tile_rows(rows, workset_per_row, sublane, budget)
    grid = _cdiv(rows, tile_rows)           # ragged last block handled by Pallas

    in_specs = [pl.BlockSpec((tile_rows, p), lambda i: (i, 0))]
    if r > 1:
        # Constant block index: Pallas will not re-DMA the unchanged blocks.
        in_specs += [pl.BlockSpec((p, r), lambda i: (0, 0)),
                     pl.BlockSpec((r, p), lambda i: (0, 0))]

    kernel = _make_node_norm_kernel(node_norm_type, float(eps), power,
                                    bool(unbiased), d, r)

    fusion = [True] * len(inputs) if pad_rows else None
    out = pl.pallas_call(
        kernel,
        out_shape=jax.ShapeDtypeStruct((rows, p), x.dtype),
        grid_spec=pltpu.PrefetchScalarGridSpec(
            num_scalar_prefetch=0,
            grid=(grid,),
            in_specs=in_specs,
            out_specs=pl.BlockSpec((tile_rows, p), lambda i: (i, 0)),
        ),
        compiler_params=pltpu.CompilerParams(
            dimension_semantics=("parallel",),
            vmem_limit_bytes=_VMEM_LIMIT_BYTES,
            allow_input_fusion=fusion),
        cost_estimate=pl.CostEstimate(
            flops=(8 + (8 * r if r > 1 else 0)) * rows * p,
            transcendentals=rows * r,
            bytes_accessed=2 * rows * p * itemsize),
    )(*inputs)

    out = out.reshape(n_g, d)
    # Only the packed-and-ragged case still pays one small slice at the end.
    return out[:n] if pad_rows else out


def node_norm_ref(x, *, node_norm_type='n', unbiased=False, eps=1e-5,
                  power_root=2):
    """Pure-JAX reference mirroring the PyTorch forward exactly."""
    x = x.astype(jnp.float32)
    d = x.shape[1]
    mean = jnp.mean(x, axis=1, keepdims=True)
    denom = (d - 1) if unbiased else d
    var = jnp.sum((x - mean) ** 2, axis=1, keepdims=True) / denom
    std = jnp.sqrt(var + eps)
    power = 1.0 / power_root
    if node_norm_type == 'n':
        return (x - mean) / std
    if node_norm_type == 'v':
        return x / std
    if node_norm_type == 'm':
        return x - mean
    if node_norm_type == 'srv':
        return x / jnp.sqrt(std)
    if node_norm_type == 'pr':
        return x / jnp.power(std, power)
    return x


if __name__ == "__main__":
    key = jax.random.PRNGKey(0)
    cases = [
        # (N, D, dtype)
        (128, 32, jnp.float32),   # packed path (r=4), evenly tiled
        (100, 32, jnp.float32),   # packed path, ragged row-blocks (no pad)
        (50, 96, jnp.float32),    # generalized lcm packing (r=4, p=384) + tiny pad
        (64, 256, jnp.float32),   # r=1 path, D multiple of 128
        (40, 200, jnp.float32),   # r=1 path, D not multiple of 128, ragged rows
        (64, 32, jnp.bfloat16),   # bf16: sublane=16 tiling path
    ]

    ok = True
    for (N, D, dt) in cases:
        key, sub = jax.random.split(key)
        x = (jax.random.normal(sub, (N, D), dtype=jnp.float32) * 2.0 + 0.5).astype(dt)
        tol = 1e-4 if dt == jnp.float32 else 3e-2
        for ntype in ('n', 'v', 'm', 'srv', 'pr'):
            out = node_norm(x, node_norm_type=ntype)
            jax.block_until_ready(out)
            ref = node_norm_ref(x.astype(jnp.float32), node_norm_type=ntype)
            same = (out.shape == ref.shape and bool(
                jnp.allclose(out.astype(jnp.float32), ref, atol=tol, rtol=tol)))
            if not same:
                ok = False
                print(f"MISMATCH shape={(N, D)} dtype={dt} node_norm_type={ntype}")

    if ok:
        print("KERNEL_OK")
</pallas_src>

<mosaic_0001>
module attributes {stable_mosaic.version = 11 : i64} {
  func.func @kernel(%arg0: i32, %arg1: memref<8x128xf32, #tpu.memory_space<vmem>>, %arg2: memref<128x4xf32, #tpu.memory_space<vmem>>, %arg3: memref<4x128xf32, #tpu.memory_space<vmem>>, %arg4: memref<8x128xf32, #tpu.memory_space<vmem>>) attributes {dimension_semantics = [#tpu.dimension_semantics<parallel>], iteration_bounds = array<i64: 4>, scalar_prefetch = 0 : i64, scratch_operands = 0 : i64, tpu.core_type = #tpu.core_type<tc>, window_params = [{transform_indices = @transform_0, window_bounds = array<i64: 8, 128>}, {pipeline_mode = #tpu.pipeline_mode<synchronous>, transform_indices = @transform_1, window_bounds = array<i64: 128, 4>}, {pipeline_mode = #tpu.pipeline_mode<synchronous>, transform_indices = @transform_2, window_bounds = array<i64: 4, 128>}, {transform_indices = @transform_3, window_bounds = array<i64: 8, 128>}]} {
    %c0 = arith.constant 0 : index
    %c0_0 = arith.constant 0 : index
    %0 = vector.load %arg1[%c0, %c0_0] : memref<8x128xf32, #tpu.memory_space<vmem>>, vector<8x128xf32>
    %c0_1 = arith.constant 0 : index
    %c0_2 = arith.constant 0 : index
    %1 = vector.load %arg2[%c0_1, %c0_2] : memref<128x4xf32, #tpu.memory_space<vmem>>, vector<128x4xf32>
    %c0_3 = arith.constant 0 : index
    %c0_4 = arith.constant 0 : index
    %2 = vector.load %arg3[%c0_3, %c0_4] : memref<4x128xf32, #tpu.memory_space<vmem>>, vector<4x128xf32>
    %cst = arith.constant dense<0.000000e+00> : vector<8x4xf32>
    %3 = tpu.matmul %0, %1, %cst {dimension_numbers = #tpu.dot_dimension_numbers<[1], [0], [0], [1], [0, 0, 1, 1], [], []>} : vector<8x128xf32>, vector<128x4xf32>, vector<8x4xf32> -> vector<8x4xf32>
    %cst_5 = arith.constant 3.125000e-02 : f32
    %4 = vector.broadcast %cst_5 : f32 to vector<8x4xf32>
    %5 = arith.mulf %3, %4 : vector<8x4xf32>
    %cst_6 = arith.constant dense<0.000000e+00> : vector<8x128xf32>
    %6 = tpu.matmul %5, %2, %cst_6 {dimension_numbers = #tpu.dot_dimension_numbers<[1], [0], [0], [1], [0, 0, 1, 1], [], []>} : vector<8x4xf32>, vector<4x128xf32>, vector<8x128xf32> -> vector<8x128xf32>
    %7 = arith.subf %0, %6 : vector<8x128xf32>
    %8 = arith.mulf %7, %7 : vector<8x128xf32>
    %cst_7 = arith.constant dense<0.000000e+00> : vector<8x4xf32>
    %9 = tpu.matmul %8, %1, %cst_7 {dimension_numbers = #tpu.dot_dimension_numbers<[1], [0], [0], [1], [0, 0, 1, 1], [], []>} : vector<8x128xf32>, vector<128x4xf32>, vector<8x4xf32> -> vector<8x4xf32>
    %cst_8 = arith.constant 3.125000e-02 : f32
    %10 = vector.broadcast %cst_8 : f32 to vector<8x4xf32>
    %11 = arith.mulf %9, %10 : vector<8x4xf32>
    %cst_9 = arith.constant 9.99999974E-6 : f32
    %12 = vector.broadcast %cst_9 : f32 to vector<8x4xf32>
    %13 = arith.addf %11, %12 : vector<8x4xf32>
    %14 = math.rsqrt %13 : vector<8x4xf32>
    %cst_10 = arith.constant dense<0.000000e+00> : vector<8x128xf32>
    %15 = tpu.matmul %14, %2, %cst_10 {dimension_numbers = #tpu.dot_dimension_numbers<[1], [0], [0], [1], [0, 0, 1, 1], [], []>} : vector<8x4xf32>, vector<4x128xf32>, vector<8x128xf32> -> vector<8x128xf32>
    %16 = arith.mulf %7, %15 : vector<8x128xf32>
    %c0_11 = arith.constant 0 : index
    %c0_12 = arith.constant 0 : index
    %17 = vector.load %arg4[%c0_11, %c0_12] : memref<8x128xf32, #tpu.memory_space<vmem>>, vector<8x128xf32>
    tpu.vector_store %arg4[%c0_11, %c0_12], %16 {strides = array<i32>} : memref<8x128xf32, #tpu.memory_space<vmem>>, vector<8x128xf32>,
    return
  }
  func.func @transform_0(%arg0: i32) -> (i32, i32) {
    %c0_i32 = arith.constant 0 : i32
    %c0_i32_0 = arith.constant 0 : i32
    return %arg0, %c0_i32 : i32, i32
  }
  func.func @transform_1(%arg0: i32) -> (i32, i32) {
    %c0_i32 = arith.constant 0 : i32
    %c0_i32_0 = arith.constant 0 : i32
    %c0_i32_1 = arith.constant 0 : i32
    return %c0_i32, %c0_i32_0 : i32, i32
  }
  func.func @transform_2(%arg0: i32) -> (i32, i32) {
    %c0_i32 = arith.constant 0 : i32
    %c0_i32_0 = arith.constant 0 : i32
    %c0_i32_1 = arith.constant 0 : i32
    return %c0_i32, %c0_i32_0 : i32, i32
  }
  func.func @transform_3(%arg0: i32) -> (i32, i32) {
    %c0_i32 = arith.constant 0 : i32
    %c0_i32_0 = arith.constant 0 : i32
    return %arg0, %c0_i32 : i32, i32
  }
}

</mosaic_0001>

<bundles_post_ra>
// kernel: node_norm.1
= control target key start
LH: loop header
LB: loop body
LE: loop exit
PB: predicated region body
PF: predicated region fallthrough
CT: control target
= control target key end

     0   :  { %s396_s12 = smov 0   ;;  %s477_s0 = inlined_call_operand.vmem [shape: f32[32,128], index: 0, kind: input, shape index: {}]   ;;  %s478_s1 = inlined_call_operand.vmem [shape: f32[128,4], index: 1, kind: input, shape index: {}]   ;;  %s479_s2 = inlined_call_operand.vmem [shape: f32[4,128], index: 2, kind: input, shape index: {}]   ;;  %s480_s3 = inlined_call_operand.vmem [shape: f32[32,128], index: 3, kind: output, shape index: {}]  }
   0x1 LB: > { %s345_s13 = sadd.s32 4294967295, %s374_s12   ;;  %p349_p0 = scmp.ge.s32.totalorder %s374_s12, 1  ;;  %s374_s12 = sphi %s396_s12, %s13_s12  }
   0x2   : > { %p136_p1 = scmp.lt.s32.totalorder %s374_s12, 5 }
   0x4   : > { %p137_p2 = pnand %p349_p0, %p136_p1 }
   0x5   : > { %p158_p3 = scmp.lt.s32.totalorder (!%p137_p2), %s345_s13, 3 }
   0x6   : > { %140 = sbr.rel (%p137_p2) target bundleno = 590 (0x24e), region = 32 }
   0xb   : > { %v182_v0 = vld [vmem:[%s478_s1 + $0x78] sm:$0xff]  ;;  %v181_v1 = vld [vmem:[%s478_s1 + $0x70] sm:$0xff]  ;;  %v180_v2 = vld [vmem:[%s478_s1 + $0x68] sm:$0xff]  ;;  %s482_s13 = smov (!%p158_p3, %s345_s13), 3  ;;  %vm209_vm0 = vcmask 1043456   ;;  %vm205_vm1 = vcmask 31744  }
   0xc   : > { %184 = vmatpush.msra.mxu0 %v182_v0  ;;  %235 = vmatpush.msra.mxu2 %v182_v0  ;;  %v179_v3 = vld [vmem:[%s478_s1 + $0x60] sm:$0xff]  ;;  %v178_v4 = vld [vmem:[%s478_s1 + $0x58] sm:$0xff]  ;;  %v177_v5 = vld [vmem:[%s478_s1 + $0x50] sm:$0xff]  ;;  %s350_s15 = sshll.u32 %s482_s13, 3 }
   0xd   : > { %v176_v6 = vld [vmem:[%s478_s1 + $0x48] sm:$0xff]  ;;  %v175_v7 = vld [vmem:[%s478_s1 + $0x40] sm:$0xff]  ;;  %v174_v8 = vld [vmem:[%s478_s1 + $0x38] sm:$0xff]  ;;  %s161_s22 = scalar_lea.vmem %s477_s0, %s350_s15  ;;  %s165_s29 = scalar_lea.vmem %s480_s3, %s350_s15 }
   0xe   : > { %185 = vmatpush.msra.mxu0 %v181_v1  ;;  %236 = vmatpush.msra.mxu2 %v181_v1  ;;  %v173_v9 = vld [vmem:[%s478_s1 + $0x30] sm:$0xff]  ;;  %v172_v10 = vld [vmem:[%s478_s1 + $0x28] sm:$0xff]  ;;  %v171_v11 = vld [vmem:[%s478_s1 + $0x20] sm:$0xff] }
   0xf   : > { %v170_v12 = vld [vmem:[%s478_s1 + $0x18] sm:$0xff]  ;;  %v169_v13 = vld [vmem:[%s478_s1 + $0x10] sm:$0xff]  ;;  %v168_v14 = vld [vmem:[%s478_s1 + $0x8] sm:$0xff] }
  0x10   : > { %186 = vmatpush.msra.mxu0 %v180_v2  ;;  %237 = vmatpush.msra.mxu2 %v180_v2  ;;  %v167_v15 = vld [vmem:[%s478_s1] sm:$0xff] }
  0x11   : > { %v166_v16 = vld [vmem:[%s161_s22] sm:$0xff] }
  0x12   : > { %187 = vmatpush.msra.mxu0 %v179_v3  ;;  %238 = vmatpush.msra.mxu2 %v179_v3  ;;  %v183_v17 = vld [vmem:[%s479_s2] sm:$0xf] }
  0x13   : > { %352 = vmatpush.msk.msra.mxu1 %vm209_vm0, %v183_v17  ;;  %354 = vmatpush.msk.msra.mxu3 %vm209_vm0, %v183_v17 }
  0x14   : > { %188 = vmatpush.msra.mxu0 %v178_v4  ;;  %239 = vmatpush.msra.mxu2 %v178_v4 }
  0x16   : > { %189 = vmatpush.msra.mxu0 %v177_v5  ;;  %240 = vmatpush.msra.mxu2 %v177_v5 }
  0x18   : > { %190 = vmatpush.msra.mxu0 %v176_v6  ;;  %241 = vmatpush.msra.mxu2 %v176_v6 }
  0x1a   : > { %191 = vmatpush.msra.mxu0 %v175_v7  ;;  %242 = vmatpush.msra.mxu2 %v175_v7 }
  0x1c   : > { %192 = vmatpush.msra.mxu0 %v174_v8  ;;  %243 = vmatpush.msra.mxu2 %v174_v8 }
  0x1e   : > { %193 = vmatpush.msra.mxu0 %v173_v9  ;;  %244 = vmatpush.msra.mxu2 %v173_v9 }
  0x20   : > { %194 = vmatpush.msra.mxu0 %v172_v10  ;;  %245 = vmatpush.msra.mxu2 %v172_v10 }
  0x22   : > { %195 = vmatpush.msra.mxu0 %v171_v11  ;;  %246 = vmatpush.msra.mxu2 %v171_v11 }
  0x24   : > { %196 = vmatpush.msra.mxu0 %v170_v12  ;;  %247 = vmatpush.msra.mxu2 %v170_v12 }
  0x26   : > { %197 = vmatpush.msra.mxu0 %v169_v13  ;;  %248 = vmatpush.msra.mxu2 %v169_v13 }
  0x28   : > { %198 = vmatpush.msra.mxu0 %v168_v14  ;;  %249 = vmatpush.msra.mxu2 %v168_v14 }
  0x2a   : > { %199 = vmatpush.msra.mxu0 %v167_v15  ;;  %250 = vmatpush.msra.mxu2 %v167_v15 }
  0x2b   : > { %200 = vmatmul.f32.vlgmr.msra.gmra.mxu0 %v166_v16 }
  0xa8   : > { %v201_v18 = vpop.f32.mrf.mxu0 }
  0xa9   : > { %v204_v19 = vmul.f32 0.03125, %v201_v18 }
  0xab   : > { %353 = vmatmul.msk.f32.vlgmr.msra.gmra.mxu1 %vm205_vm1, %v204_v19 }
 0x128   : > { %v230_v20 = vpop.f32.mrf.mxu1 }
 0x129   : > { %v233_v21 = vsub.f32 %v166_v16, %v230_v20 }
 0x12b   : > { %v234_v22 = vmul.f32 %v233_v21, %v233_v21 }
 0x12d   : > { %251 = vmatmul.f32.vlgmr.msra.gmra.mxu2 %v234_v22 }
 0x1b0   : > { %v252_v23 = vpop.f32.mrf.mxu2 }
 0x1b1   : > { %v255_v24 = vmul.f32 0.03125, %v252_v23 }
 0x1b3   : > { %v256_v25 = vadd.f32 1e-05, %v255_v24 }
 0x1b5   : > { %366 = vrsqrt.f32 %v256_v25  ;;  %vm263_vm3 = vweird.f32 %v256_v25 }
 0x1bb   : > { %v367_v26 = vpop.eup %366 }
 0x1bc   : > { %v258_v27 = vmul.f32 %v367_v26, %v256_v25  ;;  %vm264_vm2 = vweird.f32 %v367_v26 }
 0x1bd   : > { %vm265_vm4 = vmor %vm263_vm3, %vm264_vm2 }
 0x1be   : > { %v259_v28 = vmul.f32 %v367_v26, %v258_v27 }
 0x1c0   : > { %v260_v29 = vmul.f32 0.5, %v259_v28 }
 0x1c2   : > { %v261_v30 = vsub.f32 1.5, %v260_v29 }
 0x1c4   : > { %v262_v31 = vmul.f32 %v367_v26, %v261_v30 }
 0x1c6   : > { %v266_v32 = vsel %vm265_vm4, %v367_v26, %v262_v31 }
 0x1c7   : > { %355 = vmatmul.msk.f32.vlgmr.msra.gmra.mxu3 %vm205_vm1, %v266_v32 }
 0x24a   : > { %v287_v33 = vpop.f32.mrf.mxu3 }
 0x24b   : > { %v290_v34 = vmul.f32 %v287_v33, %v233_v21 }
 0x24d   : > { %291 = vst [vmem:[%s165_s29] sm:$0xff] %v290_v34 }
 0x24e PF: > { %s13_s12 = sadd.s32 1, %s374_s12  }
 0x24f   : > { %p10_p4 = scmp.ge.s32.totalorder %s13_s12, 6  }
 0x251   :  { %12 = sbr.rel (!%p10_p4) target bundleno = 1 (0x1), region = 62 }

</bundles_post_ra>
